<compile_context>
chip_gen: v5e
topology: v5e:2x2
jax: 0.10.0
libtpu: 0.0.40
codegen_flags: <defaults>
</compile_context>

<pallas_src>
import functools

import jax
import jax.numpy as jnp
from jax.experimental import pallas as pl
from jax.experimental.pallas import tpu as pltpu


# ----------------------------- Pallas kernel -------------------------------


def _make_fused_kernel(filter_sizes, n_filters, L, Bt):
    """Fused conv(all branches) + ReLU + global-max-pool + concat + FC kernel."""
    F = n_filters

    def kernel(emb_ref, w_all_ref, b_all_ref, fc_w_ref, fc_b_ref, o_ref):
        # emb_ref:   (Bt, L, E)        embedding tile (compute dtype)
        # w_all_ref: (E, N_pad)        all conv filters, branch- then tap-major,
        #                              zero-padded to a multiple of 128 columns
        # b_all_ref: (1, n*F)          packed conv biases (f32)
        # fc_w_ref:  (n*F, O_pad)      FC weight, output padded to 128 lanes
        # fc_b_ref:  (1, O_pad)        FC bias (f32), padded to 128 lanes
        # o_ref:     (Bt, O_pad)
        E = emb_ref.shape[-1]
        Np = w_all_ref.shape[-1]
        emb2 = emb_ref[...].reshape(Bt * L, E)                 # (Bt*L, E)

        # One MXU matmul covers every branch and every tap.
        t = jnp.dot(emb2, w_all_ref[...],
                    preferred_element_type=jnp.float32)       # (Bt*L, N_pad)
        t = t.reshape(Bt, L, Np)

        pooled = []
        col = 0
        for bi, fs in enumerate(filter_sizes):
            L_out = L - fs + 1
            # Shift-and-add per-tap partial products (valid conv); the dh=0
            # slice seeds the accumulator (no zeros materialization).
            acc = t[:, 0:L_out, col:col + F]
            for dh in range(1, fs):
                acc = acc + t[:, dh:dh + L_out,
                              col + dh * F:col + (dh + 1) * F]
            col += fs * F
            bias = b_all_ref[:, bi * F:(bi + 1) * F]           # (1, F)
            s = jnp.maximum(acc + bias, 0.0)                   # bias + ReLU (f32)
            pooled.append(jnp.max(s, axis=1))                  # global max -> (Bt, F)

        cat = jnp.concatenate(pooled, axis=-1)                 # (Bt, n*F)
        # Dropout == identity at inference.
        out = jnp.dot(cat.astype(fc_w_ref.dtype), fc_w_ref[...],
                      preferred_element_type=jnp.float32) + fc_b_ref[...]
        o_ref[...] = out.astype(o_ref.dtype)                   # lane-dense store

    return kernel


# --------------------------- Parameter packing -----------------------------


def prepare_params(conv_ws, conv_bs, fc_w, fc_b, compute_dtype=jnp.float32):
    """One-time (model-load) repack of PyTorch-layout weights.

    conv_ws[i]: (F, 1, fs_i, E) -> columns of a single (E, N_pad) matrix,
    branch-major then tap-major (column dh*F + f inside branch block i holds
    conv_ws[i][f, 0, dh, :]); N zero-padded to a multiple of 128 lanes.
    fc_w/fc_b are zero-padded to 128 output lanes for unmasked stores.
    """
    blocks = []
    for w in conv_ws:
        E = w.shape[3]
        fs = w.shape[2]
        Fn = w.shape[0]
        blocks.append(jnp.transpose(w[:, 0, :, :], (2, 1, 0)).reshape(E, fs * Fn))
    w_all = jnp.concatenate(blocks, axis=1)
    N = w_all.shape[1]
    N_pad = max(128, -(-N // 128) * 128)
    if N_pad != N:
        w_all = jnp.pad(w_all, ((0, 0), (0, N_pad - N)))
    w_all = w_all.astype(compute_dtype)

    b_all = jnp.concatenate([b.reshape(1, -1) for b in conv_bs],
                            axis=1).astype(jnp.float32)

    out_dim = fc_w.shape[-1]
    O_pad = max(128, -(-out_dim // 128) * 128)
    fc_w_p = jnp.pad(fc_w, ((0, 0), (0, O_pad - out_dim))).astype(compute_dtype)
    fc_b_p = jnp.pad(fc_b.reshape(1, -1),
                     ((0, 0), (0, O_pad - out_dim))).astype(jnp.float32)
    return w_all, b_all, fc_w_p, fc_b_p


# ----------------------------- Batch tiling ---------------------------------


def _choose_batch_tiling(B):
    """Pick (B_pad, Bt): Bt multiple of 8 (<=128), >=2 grid steps when B>=16.

    Bt<=128 with L=16, E=32 keeps the per-step working set (emb tile, conv
    matmul intermediate, branch buffers) at a few MiB -- comfortably inside
    the default scoped VMEM on v5e/v6e and v7x's 64 MiB physical VMEM, while
    giving an MXU M dim of Bt*L >= 128 rows per step.
    """
    if B <= 8:
        return B, B                      # single small step, full-dim blocks
    B8 = -(-B // 8) * 8
    half = (B8 // 2) // 8 * 8            # keep >= 2 steps (v7x: 2 TensorCores)
    Bt = max(8, min(128, half))
    B_pad = -(-B8 // Bt) * Bt
    return B_pad, Bt


# ------------------------------ Forward pass -------------------------------


@functools.partial(jax.jit,
                   static_argnames=("filter_sizes", "output_dim",
                                    "compute_dtype"))
def cnn_forward(text, emb_w, w_all, b_all, fc_w, fc_b, *, filter_sizes,
                output_dim, compute_dtype=jnp.float32):
    # Embedding lookup: plain JAX gather (see TODO above about fusing it).
    emb = jnp.take(emb_w, text, axis=0).astype(compute_dtype)   # (B, L, E)
    B, L, E = emb.shape
    for fs in filter_sizes:
        assert fs <= L, "filter size exceeds sequence length (L_out <= 0)"
    n_filters = b_all.shape[-1] // len(filter_sizes)
    O_pad = fc_w.shape[-1]

    B_pad, Bt = _choose_batch_tiling(B)
    if B_pad != B:
        emb = jnp.pad(emb, ((0, B_pad - B), (0, 0), (0, 0)))
    grid = (B_pad // Bt,)

    kernel = _make_fused_kernel(filter_sizes, n_filters, L, Bt)

    in_specs = [
        pl.BlockSpec((Bt, L, E), lambda b: (b, 0, 0)),      # emb tile
        pl.BlockSpec(w_all.shape, lambda b: (0, 0)),        # combined conv W
        pl.BlockSpec(b_all.shape, lambda b: (0, 0)),        # packed conv biases
        pl.BlockSpec(fc_w.shape, lambda b: (0, 0)),         # FC weight (padded)
        pl.BlockSpec(fc_b.shape, lambda b: (0, 0)),         # FC bias (padded)
    ]

    out = pl.pallas_call(
        kernel,
        out_shape=jax.ShapeDtypeStruct((B_pad, O_pad), jnp.float32),
        grid=grid,
        in_specs=in_specs,
        out_specs=pl.BlockSpec((Bt, O_pad), lambda b: (b, 0)),
        compiler_params=pltpu.CompilerParams(
            dimension_semantics=("parallel",)),
    )(emb, w_all, b_all, fc_w, fc_b)

    return out[:B, :output_dim]


# ------------------------------- Reference ---------------------------------


def ref_forward(text, emb_w, conv_ws, conv_bs, fc_w, fc_b, filter_sizes):
    emb = jnp.take(emb_w, text, axis=0)[:, None, :, :]          # (B, 1, L, E)
    pooled = []
    for fs, w, b in zip(filter_sizes, conv_ws, conv_bs):
        c = jax.lax.conv_general_dilated(
            emb, w, window_strides=(1, 1), padding="VALID",
            dimension_numbers=("NCHW", "OIHW", "NCHW"),
        )                                                        # (B, F, L_out, 1)
        c = jax.nn.relu(c + b[None, :, None, None])[:, :, :, 0]
        pooled.append(jnp.max(c, axis=2))                        # (B, F)
    cat = jnp.concatenate(pooled, axis=1)
    return cat @ fc_w + fc_b


# --------------------------------- Main -------------------------------------


if __name__ == "__main__":
    vocab_size = 50
    embedding_dim = 32
    n_filters = 16
    filter_sizes = (3, 4, 5)
    output_dim = 4
    pad_idx = 0
    L = 16

    key = jax.random.PRNGKey(0)
    keys = jax.random.split(key, 11)

    emb_w = jax.random.normal(keys[0], (vocab_size, embedding_dim), jnp.float32)
    emb_w = emb_w.at[pad_idx].set(0.0)                           # padding_idx row

    conv_ws = tuple(
        0.1 * jax.random.normal(keys[1 + i], (n_filters, 1, fs, embedding_dim),
                                jnp.float32)
        for i, fs in enumerate(filter_sizes)
    )
    conv_bs = tuple(
        0.1 * jax.random.normal(keys[4 + i], (n_filters,), jnp.float32)
        for i in range(len(filter_sizes))
    )
    fc_w = 0.1 * jax.random.normal(
        keys[7], (len(filter_sizes) * n_filters, output_dim), jnp.float32)
    fc_b = 0.1 * jax.random.normal(keys[8], (output_dim,), jnp.float32)

    text_small = jax.random.randint(keys[9], (2, L), 0, vocab_size, jnp.int32)
    text_big = jax.random.randint(keys[10], (19, L), 0, vocab_size, jnp.int32)

    # f32 packed params (tight check) and bf16 packed params (loose check).
    w_all32, ba32, fcw32, fcb32 = prepare_params(
        conv_ws, conv_bs, fc_w, fc_b, jnp.float32)
    w_allbf, babf, fcwbf, fcbbf = prepare_params(
        conv_ws, conv_bs, fc_w, fc_b, jnp.bfloat16)

    # 1) Small batch (single grid step, full-dim blocks), f32.
    ref_s = ref_forward(text_small, emb_w, conv_ws, conv_bs, fc_w, fc_b,
                        filter_sizes)
    out_s = cnn_forward(text_small, emb_w, w_all32, ba32, fcw32, fcb32,
                        filter_sizes=filter_sizes, output_dim=output_dim,
                        compute_dtype=jnp.float32)
    out_s = jax.block_until_ready(out_s)
    assert out_s.shape == (2, output_dim)
    assert jnp.allclose(out_s, ref_s, atol=1e-4, rtol=1e-4), (out_s, ref_s)

    # 2) Larger, non-multiple-of-8 batch (multi-step parallel grid + zero-pad
    #    tail), f32.
    ref_b = ref_forward(text_big, emb_w, conv_ws, conv_bs, fc_w, fc_b,
                        filter_sizes)
    out_b = cnn_forward(text_big, emb_w, w_all32, ba32, fcw32, fcb32,
                        filter_sizes=filter_sizes, output_dim=output_dim,
                        compute_dtype=jnp.float32)
    out_b = jax.block_until_ready(out_b)
    assert out_b.shape == (19, output_dim)
    assert jnp.allclose(out_b, ref_b, atol=1e-4, rtol=1e-4), (out_b, ref_b)

    # 3) bf16 MXU-input path with f32 accumulation (v6e/v7x fast path).
    out_bf = cnn_forward(text_big, emb_w, w_allbf, babf, fcwbf, fcbbf,
                         filter_sizes=filter_sizes, output_dim=output_dim,
                         compute_dtype=jnp.bfloat16)
    out_bf = jax.block_until_ready(out_bf)
    assert out_bf.shape == (19, output_dim)
    assert jnp.allclose(out_bf, ref_b, atol=1e-1, rtol=1e-1), (out_bf, ref_b)

    print("KERNEL_OK")
</pallas_src>

<mosaic_0001>
module attributes {stable_mosaic.version = 11 : i64} {
  func.func @kernel(%arg0: i32, %arg1: memref<2x16x32xf32, #tpu.memory_space<vmem>>, %arg2: memref<32x256xf32, #tpu.memory_space<vmem>>, %arg3: memref<1x48xf32, #tpu.memory_space<vmem>>, %arg4: memref<48x128xf32, #tpu.memory_space<vmem>>, %arg5: memref<1x128xf32, #tpu.memory_space<vmem>>, %arg6: memref<2x128xf32, #tpu.memory_space<vmem>>) attributes {dimension_semantics = [#tpu.dimension_semantics<parallel>], iteration_bounds = array<i64: 1>, scalar_prefetch = 0 : i64, scratch_operands = 0 : i64, tpu.core_type = #tpu.core_type<tc>, window_params = [{transform_indices = @transform_0, window_bounds = array<i64: 2, 16, 32>}, {pipeline_mode = #tpu.pipeline_mode<synchronous>, transform_indices = @transform_1, window_bounds = array<i64: 32, 256>}, {pipeline_mode = #tpu.pipeline_mode<synchronous>, transform_indices = @transform_2, window_bounds = array<i64: 1, 48>}, {pipeline_mode = #tpu.pipeline_mode<synchronous>, transform_indices = @transform_3, window_bounds = array<i64: 48, 128>}, {pipeline_mode = #tpu.pipeline_mode<synchronous>, transform_indices = @transform_4, window_bounds = array<i64: 1, 128>}, {transform_indices = @transform_5, window_bounds = array<i64: 2, 128>}]} {
    %c0 = arith.constant 0 : index
    %c0_0 = arith.constant 0 : index
    %c0_1 = arith.constant 0 : index
    %0 = vector.load %arg1[%c0, %c0_0, %c0_1] : memref<2x16x32xf32, #tpu.memory_space<vmem>>, vector<2x16x32xf32>
    %1 = vector.shape_cast %0 : vector<2x16x32xf32> to vector<32x32xf32>
    %c0_2 = arith.constant 0 : index
    %c0_3 = arith.constant 0 : index
    %2 = vector.load %arg2[%c0_2, %c0_3] : memref<32x256xf32, #tpu.memory_space<vmem>>, vector<32x256xf32>
    %cst = arith.constant dense<0.000000e+00> : vector<32x256xf32>
    %3 = tpu.matmul %1, %2, %cst {dimension_numbers = #tpu.dot_dimension_numbers<[1], [0], [0], [1], [0, 0, 1, 1], [], []>} : vector<32x32xf32>, vector<32x256xf32>, vector<32x256xf32> -> vector<32x256xf32>
    %4 = vector.shape_cast %3 : vector<32x256xf32> to vector<2x16x256xf32>
    %5 = vector.extract_strided_slice %4 {offsets = [0, 0, 0], sizes = [2, 14, 16], strides = [1, 1, 1]} : vector<2x16x256xf32> to vector<2x14x16xf32>
    %6 = vector.extract_strided_slice %4 {offsets = [0, 1, 16], sizes = [2, 14, 16], strides = [1, 1, 1]} : vector<2x16x256xf32> to vector<2x14x16xf32>
    %7 = arith.addf %5, %6 : vector<2x14x16xf32>
    %8 = vector.extract_strided_slice %4 {offsets = [0, 2, 32], sizes = [2, 14, 16], strides = [1, 1, 1]} : vector<2x16x256xf32> to vector<2x14x16xf32>
    %9 = arith.addf %7, %8 : vector<2x14x16xf32>
    %c0_4 = arith.constant 0 : index
    %c0_5 = arith.constant 0 : index
    %10 = vector.load %arg3[%c0_4, %c0_5] : memref<1x48xf32, #tpu.memory_space<vmem>>, vector<1x16xf32>
    %11 = vector.shape_cast %10 : vector<1x16xf32> to vector<1x1x16xf32>
    %12 = vector.broadcast %11 : vector<1x1x16xf32> to vector<2x14x16xf32>
    %13 = arith.addf %9, %12 : vector<2x14x16xf32>
    %cst_6 = arith.constant 0.000000e+00 : f32
    %14 = vector.broadcast %cst_6 : f32 to vector<2x14x16xf32>
    %15 = arith.maximumf %13, %14 : vector<2x14x16xf32>
    %cst_7 = arith.constant dense<0xFF800000> : vector<2x16xf32>
    %16 = vector.multi_reduction <maximumf>, %15, %cst_7 [1] : vector<2x14x16xf32> to vector<2x16xf32>
    %17 = vector.extract_strided_slice %4 {offsets = [0, 0, 48], sizes = [2, 13, 16], strides = [1, 1, 1]} : vector<2x16x256xf32> to vector<2x13x16xf32>
    %18 = vector.extract_strided_slice %4 {offsets = [0, 1, 64], sizes = [2, 13, 16], strides = [1, 1, 1]} : vector<2x16x256xf32> to vector<2x13x16xf32>
    %19 = arith.addf %17, %18 : vector<2x13x16xf32>
    %20 = vector.extract_strided_slice %4 {offsets = [0, 2, 80], sizes = [2, 13, 16], strides = [1, 1, 1]} : vector<2x16x256xf32> to vector<2x13x16xf32>
    %21 = arith.addf %19, %20 : vector<2x13x16xf32>
    %22 = vector.extract_strided_slice %4 {offsets = [0, 3, 96], sizes = [2, 13, 16], strides = [1, 1, 1]} : vector<2x16x256xf32> to vector<2x13x16xf32>
    %23 = arith.addf %21, %22 : vector<2x13x16xf32>
    %c0_8 = arith.constant 0 : index
    %c16 = arith.constant 16 : index
    %24 = vector.load %arg3[%c0_8, %c16] : memref<1x48xf32, #tpu.memory_space<vmem>>, vector<1x16xf32>
    %25 = vector.shape_cast %24 : vector<1x16xf32> to vector<1x1x16xf32>
    %26 = vector.broadcast %25 : vector<1x1x16xf32> to vector<2x13x16xf32>
    %27 = arith.addf %23, %26 : vector<2x13x16xf32>
    %cst_9 = arith.constant 0.000000e+00 : f32
    %28 = vector.broadcast %cst_9 : f32 to vector<2x13x16xf32>
    %29 = arith.maximumf %27, %28 : vector<2x13x16xf32>
    %cst_10 = arith.constant dense<0xFF800000> : vector<2x16xf32>
    %30 = vector.multi_reduction <maximumf>, %29, %cst_10 [1] : vector<2x13x16xf32> to vector<2x16xf32>
    %31 = vector.extract_strided_slice %4 {offsets = [0, 0, 112], sizes = [2, 12, 16], strides = [1, 1, 1]} : vector<2x16x256xf32> to vector<2x12x16xf32>
    %32 = vector.extract_strided_slice %4 {offsets = [0, 1, 128], sizes = [2, 12, 16], strides = [1, 1, 1]} : vector<2x16x256xf32> to vector<2x12x16xf32>
    %33 = arith.addf %31, %32 : vector<2x12x16xf32>
    %34 = vector.extract_strided_slice %4 {offsets = [0, 2, 144], sizes = [2, 12, 16], strides = [1, 1, 1]} : vector<2x16x256xf32> to vector<2x12x16xf32>
    %35 = arith.addf %33, %34 : vector<2x12x16xf32>
    %36 = vector.extract_strided_slice %4 {offsets = [0, 3, 160], sizes = [2, 12, 16], strides = [1, 1, 1]} : vector<2x16x256xf32> to vector<2x12x16xf32>
    %37 = arith.addf %35, %36 : vector<2x12x16xf32>
    %38 = vector.extract_strided_slice %4 {offsets = [0, 4, 176], sizes = [2, 12, 16], strides = [1, 1, 1]} : vector<2x16x256xf32> to vector<2x12x16xf32>
    %39 = arith.addf %37, %38 : vector<2x12x16xf32>
    %c0_11 = arith.constant 0 : index
    %c32 = arith.constant 32 : index
    %40 = vector.load %arg3[%c0_11, %c32] : memref<1x48xf32, #tpu.memory_space<vmem>>, vector<1x16xf32>
    %41 = vector.shape_cast %40 : vector<1x16xf32> to vector<1x1x16xf32>
    %42 = vector.broadcast %41 : vector<1x1x16xf32> to vector<2x12x16xf32>
    %43 = arith.addf %39, %42 : vector<2x12x16xf32>
    %cst_12 = arith.constant 0.000000e+00 : f32
    %44 = vector.broadcast %cst_12 : f32 to vector<2x12x16xf32>
    %45 = arith.maximumf %43, %44 : vector<2x12x16xf32>
    %cst_13 = arith.constant dense<0xFF800000> : vector<2x16xf32>
    %46 = vector.multi_reduction <maximumf>, %45, %cst_13 [1] : vector<2x12x16xf32> to vector<2x16xf32>
    %47 = tpu.concatenate %16, %30, %46 in 1 : vector<2x16xf32>, vector<2x16xf32>, vector<2x16xf32> -> vector<2x48xf32>
    %c0_14 = arith.constant 0 : index
    %c0_15 = arith.constant 0 : index
    %48 = vector.load %arg4[%c0_14, %c0_15] : memref<48x128xf32, #tpu.memory_space<vmem>>, vector<48x128xf32>
    %cst_16 = arith.constant dense<0.000000e+00> : vector<2x128xf32>
    %49 = tpu.matmul %47, %48, %cst_16 {dimension_numbers = #tpu.dot_dimension_numbers<[1], [0], [0], [1], [0, 0, 1, 1], [], []>} : vector<2x48xf32>, vector<48x128xf32>, vector<2x128xf32> -> vector<2x128xf32>
    %c0_17 = arith.constant 0 : index
    %c0_18 = arith.constant 0 : index
    %50 = vector.load %arg5[%c0_17, %c0_18] : memref<1x128xf32, #tpu.memory_space<vmem>>, vector<1x128xf32>
    %51 = vector.broadcast %50 : vector<1x128xf32> to vector<2x128xf32>
    %52 = arith.addf %49, %51 : vector<2x128xf32>
    %c0_19 = arith.constant 0 : index
    %c0_20 = arith.constant 0 : index
    %53 = vector.load %arg6[%c0_19, %c0_20] : memref<2x128xf32, #tpu.memory_space<vmem>>, vector<2x128xf32>
    tpu.vector_store %arg6[%c0_19, %c0_20], %52 {strides = array<i32>} : memref<2x128xf32, #tpu.memory_space<vmem>>, vector<2x128xf32>,
    return
  }
  func.func @transform_0(%arg0: i32) -> (i32, i32, i32) {
    %c0_i32 = arith.constant 0 : i32
    %c0_i32_0 = arith.constant 0 : i32
    %c0_i32_1 = arith.constant 0 : i32
    return %arg0, %c0_i32, %c0_i32_0 : i32, i32, i32
  }
  func.func @transform_1(%arg0: i32) -> (i32, i32) {
    %c0_i32 = arith.constant 0 : i32
    %c0_i32_0 = arith.constant 0 : i32
    %c0_i32_1 = arith.constant 0 : i32
    return %c0_i32, %c0_i32_0 : i32, i32
  }
  func.func @transform_2(%arg0: i32) -> (i32, i32) {
    %c0_i32 = arith.constant 0 : i32
    %c0_i32_0 = arith.constant 0 : i32
    %c0_i32_1 = arith.constant 0 : i32
    return %c0_i32, %c0_i32_0 : i32, i32
  }
  func.func @transform_3(%arg0: i32) -> (i32, i32) {
    %c0_i32 = arith.constant 0 : i32
    %c0_i32_0 = arith.constant 0 : i32
    %c0_i32_1 = arith.constant 0 : i32
    return %c0_i32, %c0_i32_0 : i32, i32
  }
  func.func @transform_4(%arg0: i32) -> (i32, i32) {
    %c0_i32 = arith.constant 0 : i32
    %c0_i32_0 = arith.constant 0 : i32
    %c0_i32_1 = arith.constant 0 : i32
    return %c0_i32, %c0_i32_0 : i32, i32
  }
  func.func @transform_5(%arg0: i32) -> (i32, i32) {
    %c0_i32 = arith.constant 0 : i32
    %c0_i32_0 = arith.constant 0 : i32
    return %arg0, %c0_i32 : i32, i32
  }
}

</mosaic_0001>

<bundles_post_ra>
// kernel: cnn_forward.1
= control target key start
LH: loop header
LB: loop body
LE: loop exit
PB: predicated region body
PF: predicated region fallthrough
CT: control target
= control target key end

     0   :  { %s697_s0 = inlined_call_operand.vmem [shape: f32[2,16,32], index: 0, kind: input, shape index: {}]   ;;  %s698_s1 = inlined_call_operand.vmem [shape: f32[32,256], index: 1, kind: input, shape index: {}]   ;;  %s699_s2 = inlined_call_operand.vmem [shape: f32[1,48], index: 2, kind: input, shape index: {}]   ;;  %s700_s3 = inlined_call_operand.vmem [shape: f32[48,128], index: 3, kind: input, shape index: {}]   ;;  %s701_s4 = inlined_call_operand.vmem [shape: f32[1,128], index: 4, kind: input, shape index: {}]   ;;  %s702_s5 = inlined_call_operand.hbm [shape: f32[2,128], index: 5, kind: output, shape index: {}]  }
   0x1   :  { %v31_v0 = vld [vmem:[%s698_s1 + $0x30] sm:$0xff]  ;;  %v32_v1 = vld [vmem:[%s698_s1 + $0x38] sm:$0xff]  ;;  %v29_v2 = vld [vmem:[%s698_s1 + $0x20] sm:$0xff] }
   0x2   :  { %58 = vmatpush.msra.mxu0 %v31_v0  ;;  %447 = vmatpush.msra.mxu1 %v32_v1  ;;  %v30_v3 = vld [vmem:[%s698_s1 + $0x28] sm:$0xff]  ;;  %v27_v4 = vld [vmem:[%s698_s1 + $0x10] sm:$0xff]  ;;  %v28_v5 = vld [vmem:[%s698_s1 + $0x18] sm:$0xff] }
   0x3   :  { %443 = vmatpush.msra.mxu3 %v31_v0  ;;  %v25_v6 = vld [vmem:[%s698_s1] sm:$0xff]  ;;  %v26_v7 = vld [vmem:[%s698_s1 + $0x8] sm:$0xff] }
   0x4   :  { %59 = vmatpush.msra.mxu0 %v29_v2  ;;  %448 = vmatpush.msra.mxu1 %v30_v3 }
   0x5   :  { %444 = vmatpush.msra.mxu3 %v29_v2 }
   0x6   :  { %10 = vsyncpa [#allocation3], 0  ;;  %60 = vmatpush.msra.mxu0 %v27_v4  ;;  %449 = vmatpush.msra.mxu1 %v28_v5  ;;  %v21_v8 = vld [vmem:[%s697_s0] sm:$0xff]  ;;  %vm33_vm0 = vcmask 261120   ;;  %v22_v9 = vld [vmem:[%s697_s0 + $0x8] sm:$0xff]  ;;  %s486_s16 = smov 64  }
   0x7   :  { %445 = vmatpush.msra.mxu3 %v27_v4  ;;  %v23_v10 = vld [vmem:[%s697_s0 + $0x10] sm:$0xff]  ;;  %v24_v11 = vld [vmem:[%s697_s0 + $0x18] sm:$0xff]  ;;  %s487_s17 = smov 80   ;;  %s488_s18 = smov 112   ;;  %vm108_vm1 = vcmask 1046528   ;;  %vm186_vm2 = vcmask 1044480  }
   0x8   :  { %61 = vmatpush.msra.mxu0 %v25_v6  ;;  %450 = vmatpush.msra.mxu1 %v26_v7  ;;  %s489_s0 = smov 96   ;;  %vm131_vm3 = vcmask 1045504   ;;  %vm310_vm4 = vcmask 1043456   ;;  %v629_v62 = vld [vmem:[%s699_s2] ss:$0 sm:$0xff]  ;;  %s490_s21 = smov 32  }
   0x9   :  { %434 = vmatmul.msk.f32.vlgmr.msra.gmra.mxu0 %vm33_vm0, %v21_v8  ;;  %439 = vmatmul.msk.f32.vlgmr.msra.gmra.mxu1 %vm33_vm0, %v22_v9  ;;  %vm168_vm5 = vcmask 128000   ;;  %vm166_vm6 = vcmask 130048   ;;  %vm344_vm7 = vcmask 1048448   ;;  %vm346_vm8 = vcmask 1044352   ;;  %s491_s29 = smov 48   ;;  %s492_s11 = smov [#allocation2]  }
   0xa   :  { %446 = vmatpush.msra.mxu3 %v25_v6  ;;  %87 = vmatpush.msrb.mxu0 %v32_v1  ;;  %vm220_vm9 = vcmask 523648   ;;  %vm222_vm10 = vcmask 520576   ;;  %vm366_vm11 = vcmask 1041409   ;;  %vm393_vm12 = vcmask 392192   ;;  %s423_s12 = sshll.u32 %s492_s11, 4  ;;  %s425_s14 = sshll.u32 %s702_s5, 4  ;;  %s424_s12 = int_to_ptr.vmem [resolvable:$true] %s423_s12  ;;  %s426_s14 = int_to_ptr.hbm [resolvable:$true] %s425_s14 }
   0xb   :  { %435 = vmatmul.msk.f32.vlgmr.msra.gmra.mxu3 %vm33_vm0, %v22_v9 }
   0xc   :  { %88 = vmatpush.msrb.mxu0 %v30_v3 }
   0xe   :  { %89 = vmatpush.msrb.mxu0 %v28_v5 }
  0x10   :  { %90 = vmatpush.msrb.mxu0 %v26_v7 }
  0x11   :  { %438 = vmatmul.msk.f32.vlgmr.msrb.gmra.mxu0 %vm33_vm0, %v21_v8  ;;  %440 = vmatmul.msk.f32.gmra.mxu1 %vm33_vm0, %v23_v10 }
  0x13   :  { %436 = vmatmul.msk.f32.gmra.mxu3 %vm33_vm0, %v23_v10 }
  0x19   :  { %441 = vmatmul.msk.f32.gmra.mxu1 %vm33_vm0, %v24_v11 }
  0x1b   :  { %437 = vmatmul.msk.f32.gmra.mxu3 %vm33_vm0, %v24_v11 }
  0x86   :  { %v95_v12 = vpop.f32.mrf.mxu1  ;;  %v567_v16 = vpop.f32.mrf.mxu0 }
  0x87   :  { %v312_v13 = vrot.slane %v95_v12, 4  ;;  %v289_v14 = vrot.slane %v95_v12, 3  ;;  %v245_v15 = vrot.slane %v95_v12, 1  ;;  %v267_v18 = vrot.slane %v95_v12, 2 }
  0x88   :  { %v109_v24 = vrot.slane %v567_v16, 1  ;;  %v132_v28 = vrot.slane %v567_v16, 2  ;;  %v187_v30 = vrot.slane %v567_v16, 3 }
  0x89   :  { %319 = vrot.lane.b32.xlu1 %v312_v13, %s486_s16  ;;  %296 = vrot.lane.b32.xlu2 %v289_v14, %s487_s17 }
  0x8a   :  { %252 = vrot.lane.b32.xlu0 %v245_v15, %s488_s18 }
  0x8e   :  { %v572_v17 = vpop.f32.mrf.mxu3  ;;  %v92_v21 = vpop.f32.mrf.mxu0 }
  0x8f   :  { %v133_v19 = vrot.slane %v572_v17, 2  ;;  %v110_v20 = vrot.slane %v572_v17, 1  ;;  %v98_v22 = vpop.f32.mrf.mxu1  ;;  %v288_v23 = vrot.slane %v92_v21, 3  ;;  %v188_v25 = vrot.slane %v572_v17, 3 }
  0x90   :  { %v244_v34 = vrot.slane %v92_v21, 1  ;;  %v266_v35 = vrot.slane %v92_v21, 2  ;;  %v311_v39 = vrot.slane %v92_v21, 4  ;;  %v247_v40 = vrot.slane %v98_v22, 1 }
  0x91   :  { %140 = vrot.lane.b32.xlu1 %v133_v19, %s489_s0  ;;  %117 = vrot.lane.b32.xlu2 %v110_v20, %s488_s18  ;;  %v111_v26 = vsel %vm108_vm1, %v109_v24, %v110_v20  ;;  %v290_v27 = vsel %vm186_vm2, %v288_v23, %v289_v14  ;;  %v134_v32 = vsel %vm131_vm3, %v132_v28, %v133_v19  ;;  %v291_v45 = vrot.slane %v98_v22, 3 }
  0x92   :  { %274 = vrot.lane.b32.xlu0 %v267_v18, %s489_s0  ;;  %v189_v33 = vsel %vm186_vm2, %v187_v30, %v188_v25  ;;  %v246_v37 = vsel %vm108_vm1, %v244_v34, %v245_v15  ;;  %v268_v38 = vsel %vm131_vm3, %v266_v35, %v267_v18  ;;  %v313_v42 = vsel %vm310_vm4, %v311_v39, %v312_v13 }
  0x93   :  { %v269_v46 = vrot.slane %v98_v22, 2  ;;  %v314_v47 = vrot.slane %v98_v22, 4 }
  0x96   :  { %v600_v44 = vpop.f32.mrf.mxu3 }
  0x97   :  { %v101_v29 = vpop.f32.mrf.mxu1  ;;  %v112_v56 = vrot.slane %v600_v44, 1  ;;  %v190_v57 = vrot.slane %v600_v44, 3  ;;  %v135_v58 = vrot.slane %v600_v44, 2 }
  0x98   :  { %v248_v31 = vrot.slane %v101_v29, 1  ;;  %v292_v36 = vrot.slane %v101_v29, 3  ;;  %v270_v41 = vrot.slane %v101_v29, 2  ;;  %v315_v48 = vrot.slane %v101_v29, 4 }
  0x99   :  { %115 = vrot.lane.b32.xlu2 %v111_v26, %s488_s18  ;;  %294 = vrot.lane.b32.xlu1 %v290_v27, %s487_s17 }
  0x9a   :  { %195 = vrot.lane.b32.xlu0 %v188_v25, %s487_s17  ;;  %v249_v43 = vsel %vm108_vm1, %v247_v40, %v248_v31  ;;  %v293_v49 = vsel %vm186_vm2, %v291_v45, %v292_v36  ;;  %v271_v50 = vsel %vm131_vm3, %v269_v46, %v270_v41  ;;  %v316_v51 = vsel %vm310_vm4, %v314_v47, %v315_v48 }
  0x9e   :  { %v609_v52 = vpop.f32.mrf.mxu3 }
  0x9f   :  { %v136_v53 = vrot.slane %v609_v52, 2  ;;  %v113_v54 = vrot.slane %v609_v52, 1  ;;  %v191_v55 = vrot.slane %v609_v52, 3 }
  0xa1   :  { %193 = vrot.lane.b32.xlu2 %v189_v33, %s487_s17  ;;  %256 = vrot.lane.b32.xlu1 %v248_v31, %s488_s18  ;;  %v114_v59 = vsel %vm108_vm1, %v112_v56, %v113_v54  ;;  %v192_v60 = vsel %vm186_vm2, %v190_v57, %v191_v55  ;;  %v137_v61 = vsel %vm131_vm3, %v135_v58, %v136_v53  ;;  %v387_v56 = vld [vmem:[%s700_s3 + $0x20] sm:$0xff] }
  0xa2   :  { %138 = vrot.lane.b32.xlu0 %v134_v32, %s489_s0 }
  0xa9   :  { %300 = vrot.lane.b32.xlu1 %v292_v36, %s487_s17  ;;  %272 = vrot.lane.b32.xlu2 %v268_v38, %s489_s0 }
  0xaa   :  { %250 = vrot.lane.b32.xlu0 %v246_v37, %s488_s18 }
  0xb1   :  { %254 = vrot.lane.b32.xlu1 %v249_v43, %s488_s18  ;;  %278 = vrot.lane.b32.xlu2 %v270_v41, %s489_s0 }
  0xb2   :  { %317 = vrot.lane.b32.xlu0 %v313_v42, %s486_s16 }
  0xb9   :  { %276 = vrot.lane.b32.xlu1 %v271_v50, %s489_s0  ;;  %321 = vrot.lane.b32.xlu2 %v316_v51, %s486_s16 }
  0xba   :  { %298 = vrot.lane.b32.xlu0 %v293_v49, %s487_s17 }
  0xc1   :  { %121 = vrot.lane.b32.xlu1 %v113_v54, %s488_s18  ;;  %199 = vrot.lane.b32.xlu2 %v191_v55, %s487_s17  ;;  %v388_v55 = vld [vmem:[%s700_s3 + $0x28] sm:$0xff] }
  0xc2   :  { %144 = vrot.lane.b32.xlu0 %v136_v53, %s489_s0  ;;  %407 = vmatpush.msra.mxu2 %v388_v55 }
  0xc4   :  { %408 = vmatpush.msra.mxu2 %v387_v56 }
  0xc9   :  { %197 = vrot.lane.b32.xlu1 %v192_v60, %s487_s17  ;;  %142 = vrot.lane.b32.xlu2 %v137_v61, %s489_s0 }
  0xca   :  { %119 = vrot.lane.b32.xlu0 %v114_v59, %s488_s18 }
  0xd1   :  { %209 = vrot.lane.b32.xlu1 %v629_v62, %s490_s21  ;;  %333 = vrot.lane.b32.xlu2 %v629_v62, %s487_s17 }
  0xd2   :  { %323 = vrot.lane.b32.xlu0 %v315_v48, %s486_s16 }
  0xe3   :  { %v297_v63 = vpop.permute.xlu2 %296 }
  0xeb   :  { %v118_v0 = vpop.permute.xlu2 %117 }
  0xec   :  { %v128_v13 = vadd.f32 %v118_v0, %v572_v17 }
  0xf3   :  { %v116_v1 = vpop.permute.xlu2 %115 }
  0xf4   :  { %v127_v19 = vadd.f32 %v116_v1, %v567_v16 }
  0xfb   :  { %v320_v2 = vpop.permute.xlu1 %319  ;;  %v635_v4 = vpop.permute.xlu2 %193 }
  0xfc   :  { %v253_v3 = vpop.permute.xlu0 %252 }
  0xfd   :  { %v263_v5 = vadd.f32 %v253_v3, %v572_v17  ;;  %v386_v3 = vld [vmem:[%s700_s3 + $0x18] sm:$0xff] }
  0xfe   :  { %409 = vmatpush.msra.mxu2 %v386_v3 }
 0x103   :  { %v141_v8 = vpop.permute.xlu1 %140  ;;  %v273_v9 = vpop.permute.xlu2 %272 }
 0x104   :  { %v275_v6 = vpop.permute.xlu0 %274  ;;  %v641_v18 = vadd.f32 %v141_v8, %v128_v13 }
 0x105   :  { %v285_v7 = vadd.f32 %v275_v6, %v263_v5 }
 0x106   :  { %v159_v20 = vadd.f32 %v629_v62, %v641_v18 }
 0x107   :  { %v307_v10 = vadd.f32 %v297_v63, %v285_v7  ;;  %v385_v7 = vld [vmem:[%s700_s3 + $0x10] sm:$0xff] }
 0x108   :  { %v163_v25 = vmax.f32 %v159_v20, 0.0  ;;  %410 = vmatpush.msra.mxu2 %v385_v7 }
 0x109   :  { %v330_v11 = vadd.f32 %v320_v2, %v307_v10 }
 0x10a   :  { %v169_v17 = vsel %vm168_vm5, %v163_v25, -inf }
 0x10b   :  { %v295_v14 = vpop.permute.xlu1 %294  ;;  %v279_v15 = vpop.permute.xlu2 %278 }
 0x10c   :  { %v638_v12 = vpop.permute.xlu0 %195 }
 0x113   :  { %v257_v23 = vpop.permute.xlu1 %256  ;;  %v322_v24 = vpop.permute.xlu2 %321 }
 0x114   :  { %v139_v21 = vpop.permute.xlu0 %138  ;;  %v265_v61 = vadd.f32 %v257_v23, %v609_v52 }
 0x115   :  { %v150_v22 = vadd.f32 %v139_v21, %v127_v19 }
 0x117   :  { %v158_v26 = vadd.f32 %v629_v62, %v150_v22  ;;  %v205_v13 = vadd.f32 %v635_v4, %v150_v22 }
 0x119   :  { %v162_v27 = vmax.f32 %v158_v26, 0.0 }
 0x11b   :  { %v167_v28 = vsel %vm166_vm6, %v162_v27, -inf  ;;  %v301_v31 = vpop.permute.xlu1 %300  ;;  %v200_v32 = vpop.permute.xlu2 %199 }
 0x11c   :  { %v251_v29 = vpop.permute.xlu0 %250  ;;  %v170_v30 = vmax.f32 %v167_v28, %v169_v17 }
 0x11d   :  { %v262_v36 = vadd.f32 %v251_v29, %v567_v16 }
 0x11e   :  { %v171_v60 = vrot.slane %v170_v30, 4 }
 0x11f   :  { %v284_v37 = vadd.f32 %v273_v9, %v262_v36 }
 0x120   :  { %v172_v8 = vmax.f32 %v170_v30, %v171_v60 }
 0x121   :  { %v306_v40 = vadd.f32 %v295_v14, %v284_v37 }
 0x122   :  { %v173_v25 = vrot.slane %v172_v8, 2 }
 0x123   :  { %v255_v34 = vpop.permute.xlu1 %254  ;;  %v143_v35 = vpop.permute.xlu2 %142 }
 0x124   :  { %v318_v33 = vpop.permute.xlu0 %317  ;;  %v264_v43 = vadd.f32 %v255_v34, %v600_v44  ;;  %v174_v37 = vmax.f32 %v172_v8, %v173_v25 }
 0x125   :  { %v329_v42 = vadd.f32 %v318_v33, %v306_v40 }
 0x126   :  { %v175_v56 = vrot.slane %v174_v37, 1 }
 0x128   :  { %v176_v3 = vmax.f32 %v174_v37, %v175_v56 }
 0x12b   :  { %v277_v39 = vpop.permute.xlu1 %276  ;;  %v334_v41 = vpop.permute.xlu2 %333 }
 0x12c   :  { %v299_v38 = vpop.permute.xlu0 %298  ;;  %v336_v45 = vadd.f32 %v334_v41, %v329_v42  ;;  %v337_v46 = vadd.f32 %v334_v41, %v330_v11  ;;  %v286_v48 = vadd.f32 %v277_v39, %v264_v43 }
 0x12e   :  { %v340_v51 = vmax.f32 %v336_v45, 0.0  ;;  %v341_v53 = vmax.f32 %v337_v46, 0.0  ;;  %v308_v16 = vadd.f32 %v299_v38, %v286_v48 }
 0x130   :  { %v345_v57 = vsel %vm344_vm7, %v340_v51, -inf  ;;  %v347_v58 = vsel %vm346_vm8, %v341_v53, -inf  ;;  %v331_v63 = vadd.f32 %v322_v24, %v308_v16 }
 0x131   :  { %v348_v5 = vmax.f32 %v345_v57, %v347_v58 }
 0x132   :  { %v338_v9 = vadd.f32 %v334_v41, %v331_v63 }
 0x133   :  { %v122_v49 = vpop.permute.xlu1 %121  ;;  %v349_v19 = vrot.slane %v348_v5, 4 }
 0x134   :  { %v145_v47 = vpop.permute.xlu0 %144  ;;  %v130_v50 = vadd.f32 %v122_v49, %v609_v52  ;;  %v287_v52 = vadd.f32 %v279_v15, %v265_v61  ;;  %v342_v26 = vmax.f32 %v338_v9, 0.0 }
 0x135   :  { %v350_v4 = vmax.f32 %v348_v5, %v349_v19 }
 0x136   :  { %v153_v54 = vadd.f32 %v145_v47, %v130_v50  ;;  %v309_v14 = vadd.f32 %v301_v31, %v287_v52 }
 0x137   :  { %v351_v49 = vrot.slane %v350_v4, 2 }
 0x138   :  { %v161_v0 = vadd.f32 %v629_v62, %v153_v54  ;;  %v208_v21 = vadd.f32 %v200_v32, %v153_v54 }
 0x13a   :  { %v165_v10 = vmax.f32 %v161_v0, 0.0 }
 0x13b   :  { %v198_v1 = vpop.permute.xlu1 %197 }
 0x13c   :  { %v120_v59 = vpop.permute.xlu0 %119  ;;  %v178_v15 = vsel %vm168_vm5, %v165_v10, -inf }
 0x13d   :  { %v129_v2 = vadd.f32 %v120_v59, %v600_v44  ;;  %v206_v44 = vadd.f32 %v638_v12, %v641_v18  ;;  %v352_v59 = vmax.f32 %v350_v4, %v351_v49 }
 0x13f   :  { %v152_v6 = vadd.f32 %v143_v35, %v129_v2  ;;  %v355_v35 = vsel %vm344_vm7, %v342_v26, -inf }
 0x141   :  { %v160_v11 = vadd.f32 %v629_v62, %v152_v6  ;;  %v207_v23 = vadd.f32 %v198_v1, %v152_v6  ;;  %v353_v6 = vrot.slane %v352_v59, 1 }
 0x143   :  { %v164_v20 = vmax.f32 %v160_v11, 0.0  ;;  %v210_v27 = vpop.permute.xlu1 %209 }
 0x144   :  { %v324_v24 = vpop.permute.xlu0 %323  ;;  %v212_v28 = vadd.f32 %v210_v27, %v205_v13  ;;  %v213_v12 = vadd.f32 %v210_v27, %v206_v44  ;;  %v214_v18 = vadd.f32 %v210_v27, %v207_v23  ;;  %v215_v29 = vadd.f32 %v210_v27, %v208_v21  ;;  %v384_v21 = vld [vmem:[%s700_s3 + $0x8] sm:$0xff]  ;;  %v383_v23 = vld [vmem:[%s700_s3] sm:$0xff] }
 0x145   :  { %v332_v17 = vadd.f32 %v324_v24, %v309_v14  ;;  %v177_v62 = vsel %vm166_vm6, %v164_v20, -inf  ;;  %v354_v13 = vmax.f32 %v352_v59, %v353_v6  ;;  %411 = vmatpush.msra.mxu2 %v384_v21  ;;  %v459_v27 = vld [vmem:[%s701_s4] ss:$0 sm:$0xff] }
 0x146   :  { %v179_v30 = vmax.f32 %v177_v62, %v178_v15  ;;  %v216_v31 = vmax.f32 %v212_v28, 0.0  ;;  %v217_v32 = vmax.f32 %v213_v12, 0.0  ;;  %v218_v33 = vmax.f32 %v214_v18, 0.0 }
 0x147   :  { %v339_v22 = vadd.f32 %v334_v41, %v332_v17  ;;  %v219_v34 = vmax.f32 %v215_v29, 0.0  ;;  %412 = vmatpush.msra.mxu2 %v383_v23 }
 0x148   :  { %v180_v38 = vrot.slane %v179_v30, 4  ;;  %v221_v39 = vsel %vm220_vm9, %v216_v31, -inf  ;;  %v223_v40 = vsel %vm222_vm10, %v217_v32, -inf  ;;  %v231_v42 = vsel %vm220_vm9, %v218_v33, -inf }
 0x149   :  { %v343_v36 = vmax.f32 %v339_v22, 0.0  ;;  %v232_v43 = vsel %vm222_vm10, %v219_v34, -inf  ;;  %v224_v45 = vmax.f32 %v221_v39, %v223_v40 }
 0x14a   :  { %v233_v46 = vmax.f32 %v231_v42, %v232_v43  ;;  %v181_v47 = vmax.f32 %v179_v30, %v180_v38 }
 0x14b   :  { %v356_v41 = vsel %vm346_vm8, %v343_v36, -inf  ;;  %v225_v50 = vrot.slane %v224_v45, 4 }
 0x14c   :  { %v357_v48 = vmax.f32 %v355_v35, %v356_v41  ;;  %v234_v51 = vrot.slane %v233_v46, 4  ;;  %v182_v53 = vrot.slane %v181_v47, 2 }
 0x14d   :  { %v226_v54 = vmax.f32 %v224_v45, %v225_v50 }
 0x14e   :  { %v358_v16 = vrot.slane %v357_v48, 4  ;;  %v235_v55 = vmax.f32 %v233_v46, %v234_v51  ;;  %v183_v57 = vmax.f32 %v181_v47, %v182_v53 }
 0x14f   :  { %v227_v60 = vrot.slane %v226_v54, 2 }
 0x150   :  { %v359_v58 = vmax.f32 %v357_v48, %v358_v16  ;;  %v236_v61 = vrot.slane %v235_v55, 2  ;;  %v184_v63 = vrot.slane %v183_v57, 1 }
 0x151   :  { %v228_v1 = vmax.f32 %v226_v54, %v227_v60 }
 0x152   :  { %v360_v0 = vrot.slane %v359_v58, 2  ;;  %v237_v2 = vmax.f32 %v235_v55, %v236_v61  ;;  %v185_v5 = vmax.f32 %v183_v57, %v184_v63 }
 0x153   :  { %v229_v8 = vrot.slane %v228_v1, 1 }
 0x154   :  { %v361_v7 = vmax.f32 %v359_v58, %v360_v0  ;;  %v238_v52 = vrot.slane %v237_v2, 1  ;;  %v367_v9 = vsel %vm366_vm11, %v185_v5, %v176_v3 }
 0x155   :  { %v230_v11 = vmax.f32 %v228_v1, %v229_v8 }
 0x156   :  { %v362_v10 = vrot.slane %v361_v7, 1  ;;  %v239_v44 = vmax.f32 %v237_v2, %v238_v52 }
 0x158   :  { %v363_v14 = vmax.f32 %v361_v7, %v362_v10  ;;  %v371_v19 = vsel %vm366_vm11, %v239_v44, %v230_v11 }
 0x159   :  { %372 = vrot.lane.b32.xlu0 %v371_v19, %s489_s0 }
 0x15a   :  { %v377_v20 = vsel %vm366_vm11, %v363_v14, %v354_v13 }
 0x15b   :  { %378 = vrot.lane.b32.xlu1 %v377_v20, %s491_s29 }
 0x1cb   :  { %v373_v24 = vpop.permute.xlu0 %372 }
 0x1cc   :  { %v381_v25 = vsel %vm166_vm6, %v367_v9, %v373_v24 }
 0x1cd   :  { %v379_v26 = vpop.permute.xlu1 %378 }
 0x1ce   :  { %v382_v15 = vsel %vm33_vm0, %v381_v25, %v379_v26 }
 0x1cf   :  { %442 = vmatmul.msk.f32.vlgmr.msra.gmra.mxu2 %vm393_vm12, %v382_v15 }
 0x252   :  { %v414_v17 = vpop.f32.mrf.mxu2 }
 0x253   :  { %v415_v62 = vadd.f32 %v459_v27, %v414_v17 }
 0x255   :  { %417 = vst [vmem:[#allocation2] sm:$0x3] %v415_v62 }
 0x256   :  { %428 = dma.vmem_to_hbm [thread:$0]  %s424_s12, 32, %s426_s14, [#allocation3]  }
 0x257   :  { %484 = dma.done.wait [#allocation3], 32  }
 0x258   :  { %485 = vsyncadd [#allocation3], 4294967264 }
 0x259   :  { %433 = vsyncpa [#allocation3], 1 }

</bundles_post_ra>
